<compile_context>
chip_gen: v7x
topology: tpu7x:2x2x1
jax: 0.10.0
libtpu: 0.0.40
codegen_flags: <defaults>
</compile_context>

<pallas_src>
import functools

import jax
import jax.numpy as jnp
from jax.experimental import pallas as pl
from jax.experimental.pallas import tpu as pltpu

# ---- model hyper-params (small, consistent with the module's __init__) ----
D_MODEL = 32
NHEAD = 4
DIM_FF = 64
HEAD_DIM = D_MODEL // NHEAD
LN_EPS = 1e-5

SEQ_LEN = 8
BATCH = 2

# ---- packed parameter slab layout: (PARAM_ROWS, 128) f32, everything at lane 0 ----
PARAM_WIDTH = 128
ROW_W_CAT = 0      # 64 rows : fused QKV weight (2E, 3E), cols 0..95
ROW_W_O = 64       # 32 rows : out-proj weight  (E, E),   cols 0..31
ROW_W_1 = 96       # 32 rows : linear1 weight   (E, F),   cols 0..63
ROW_W_2 = 128      # 64 rows : linear2 weight   (F, E),   cols 0..31
ROW_VEC = 192      # 8 rows  : packed bias / gamma / beta vectors
PARAM_ROWS = 200

# vector-row offsets inside the ROW_VEC block
(VEC_B_QKV, VEC_B_O, VEC_B1, VEC_B2, VEC_G1, VEC_BE1, VEC_G2, VEC_BE2) = range(8)


def encoder_layer_kernel(x_ref, p_ref, out_ref, *, n_batch):
    """Whole problem in one step.

    x_ref:   (R, 2E) = [x | pos], R = L*N, row r belongs to batch (r % n_batch).
    p_ref:   (PARAM_ROWS, 128) packed parameter slab.
    out_ref: (R, E).
    """
    xcat = x_ref[...]                                   # (R, 2E) f32
    x = xcat[:, :D_MODEL]                               # residual input
    n_rows = xcat.shape[0]

    vecs = p_ref[ROW_VEC:ROW_VEC + 8, :]                # (8, 128) packed vectors
    b_qkv = vecs[VEC_B_QKV:VEC_B_QKV + 1, 0:3 * D_MODEL]    # (1, 3E) = [bq|bk|bv]
    b_o = vecs[VEC_B_O:VEC_B_O + 1, 0:D_MODEL]
    b_1 = vecs[VEC_B1:VEC_B1 + 1, 0:DIM_FF]
    b_2 = vecs[VEC_B2:VEC_B2 + 1, 0:D_MODEL]
    g_1 = vecs[VEC_G1:VEC_G1 + 1, 0:D_MODEL]
    be_1 = vecs[VEC_BE1:VEC_BE1 + 1, 0:D_MODEL]
    g_2 = vecs[VEC_G2:VEC_G2 + 1, 0:D_MODEL]
    be_2 = vecs[VEC_BE2:VEC_BE2 + 1, 0:D_MODEL]

    # --- fully fused in-projection: ONE matmul gives [q | k | v] ---
    w_cat = p_ref[ROW_W_CAT:ROW_W_CAT + 2 * D_MODEL, 0:3 * D_MODEL]   # (2E, 3E)
    qkv = jnp.dot(xcat, w_cat, preferred_element_type=jnp.float32) + b_qkv
    scale = 1.0 / (HEAD_DIM ** 0.5)
    q = qkv[:, 0:D_MODEL] * scale
    k = qkv[:, D_MODEL:2 * D_MODEL]
    v = qkv[:, 2 * D_MODEL:3 * D_MODEL]

    # Block-diagonal batch mask over the flattened rows (boolean, no convert).
    r_id = jax.lax.broadcasted_iota(jnp.int32, (n_rows, n_rows), 0)
    c_id = jax.lax.broadcasted_iota(jnp.int32, (n_rows, n_rows), 1)
    same_batch = (r_id % n_batch) == (c_id % n_batch)

    # --- multi-head attention with W_o folded into the head loop ---
    w_o = p_ref[ROW_W_O:ROW_W_O + D_MODEL, 0:D_MODEL]   # (E, E), (in, out) layout
    attn = jnp.zeros((n_rows, D_MODEL), jnp.float32)
    for h in range(NHEAD):
        lo, hi = h * HEAD_DIM, (h + 1) * HEAD_DIM
        qh = q[:, lo:hi]                                 # (R, hd) (already scaled)
        kh = k[:, lo:hi]
        vh = v[:, lo:hi]
        # NT dot_general: contract dim 1 of both operands -> no explicit kh.T.
        s = jax.lax.dot_general(qh, kh, (((1,), (1,)), ((), ())),
                                preferred_element_type=jnp.float32)   # (R, R)
        s = s - jnp.max(s, axis=-1, keepdims=True)
        p = jnp.where(same_batch, jnp.exp(s), 0.0)       # zero cross-batch pairs
        # Exact reciprocal: approx=True (~2^-12 rel err) is too close to the
        # 1e-4 verification tolerance.
        p = p * pl.reciprocal(jnp.sum(p, axis=-1, keepdims=True), approx=False)
        ctx_h = jnp.dot(p, vh, preferred_element_type=jnp.float32)    # (R, hd)
        # 8-row sublane-aligned W_o slice; accumulate the output projection.
        attn = attn + jnp.dot(ctx_h, w_o[lo:hi, :],
                              preferred_element_type=jnp.float32)
    attn = attn + b_o

    # --- residual + LayerNorm 1 ---
    y = x + attn
    mu = jnp.mean(y, axis=-1, keepdims=True)
    var = jnp.mean((y - mu) ** 2, axis=-1, keepdims=True)
    y = (y - mu) * jax.lax.rsqrt(var + LN_EPS) * g_1 + be_1

    # --- feed-forward (linear1 -> relu -> linear2) ---
    w_1 = p_ref[ROW_W_1:ROW_W_1 + D_MODEL, 0:DIM_FF]     # (E, F)
    w_2 = p_ref[ROW_W_2:ROW_W_2 + DIM_FF, 0:D_MODEL]     # (F, E)
    h1 = jnp.maximum(jnp.dot(y, w_1, preferred_element_type=jnp.float32) + b_1, 0.0)
    h2 = jnp.dot(h1, w_2, preferred_element_type=jnp.float32) + b_2

    # --- residual + LayerNorm 2 ---
    z = y + h2
    mu2 = jnp.mean(z, axis=-1, keepdims=True)
    var2 = jnp.mean((z - mu2) ** 2, axis=-1, keepdims=True)
    z = (z - mu2) * jax.lax.rsqrt(var2 + LN_EPS) * g_2 + be_2

    out_ref[...] = z.astype(out_ref.dtype)


def transformer_encoder_layer(src, pos, params):
    """src, pos: (L, N, E) float32 (PyTorch seq-first layout). Returns (L, N, E)."""
    L, N, E = src.shape
    R = L * N
    # Free reshapes (contiguous, row-major): row r <-> (l = r // N, n = r % N);
    # the single concatenate gives the kernel one activation input.
    xcat = jnp.concatenate([src.reshape(R, E), pos.reshape(R, E)], axis=1)  # (R, 2E)

    def full(shape):
        return pl.BlockSpec(shape, lambda i, nd=len(shape): (0,) * nd)

    out = pl.pallas_call(
        functools.partial(encoder_layer_kernel, n_batch=N),
        out_shape=jax.ShapeDtypeStruct((R, E), src.dtype),
        grid=(1,),            # single step: total footprint is a few hundred KB
        in_specs=[full((R, 2 * E)), full(params.shape)],
        out_specs=full((R, E)),
        compiler_params=pltpu.CompilerParams(
            dimension_semantics=("arbitrary",)),
    )(xcat, params)

    return out.reshape(L, N, E)


# ------------------------- parameter construction -------------------------
def make_params(key):
    ks = jax.random.split(key, 10)
    scale = 0.05
    # PyTorch convention: Linear weight is (out, in); MHA in_proj_weight is (3E, E).
    in_proj_w = scale * jax.random.normal(ks[0], (3 * D_MODEL, D_MODEL), jnp.float32)
    in_proj_b = scale * jax.random.normal(ks[1], (3 * D_MODEL,), jnp.float32)
    out_proj_w = scale * jax.random.normal(ks[2], (D_MODEL, D_MODEL), jnp.float32)
    out_proj_b = scale * jax.random.normal(ks[3], (D_MODEL,), jnp.float32)
    w1 = scale * jax.random.normal(ks[4], (DIM_FF, D_MODEL), jnp.float32)
    b1 = scale * jax.random.normal(ks[5], (DIM_FF,), jnp.float32)
    w2 = scale * jax.random.normal(ks[6], (D_MODEL, DIM_FF), jnp.float32)
    b2 = scale * jax.random.normal(ks[7], (D_MODEL,), jnp.float32)
    g1 = jnp.ones((D_MODEL,), jnp.float32)
    be1 = jnp.zeros((D_MODEL,), jnp.float32)
    g2 = jnp.ones((D_MODEL,), jnp.float32)
    be2 = jnp.zeros((D_MODEL,), jnp.float32)

    wq, wk, wv = jnp.split(in_proj_w, 3, axis=0)
    bq, bk, bv = jnp.split(in_proj_b, 3, axis=0)

    torch_params = dict(wq=wq, wk=wk, wv=wv, bq=bq, bk=bk, bv=bv,
                        wo=out_proj_w, bo=out_proj_b,
                        w1=w1, b1=b1, w2=w2, b2=b2,
                        g1=g1, be1=be1, g2=g2, be2=be2)

    # Fused QKV weight (2E, 3E): top half multiplies x, bottom half multiplies pos.
    # q = x@Wq.T + pos@Wq.T, k likewise, v = x@Wv.T only.
    w_x = jnp.concatenate([wq.T, wk.T, wv.T], axis=1)                     # (E, 3E)
    w_p = jnp.concatenate([wq.T, wk.T, jnp.zeros_like(wv.T)], axis=1)     # (E, 3E)
    w_cat = jnp.concatenate([w_x, w_p], axis=0)                           # (2E, 3E)

    def pad_rc(a):
        return jnp.pad(a, ((0, 0), (0, PARAM_WIDTH - a.shape[1])))

    def row_vec(*vs):
        v = jnp.concatenate(vs) if len(vs) > 1 else vs[0]
        return jnp.pad(v, (0, PARAM_WIDTH - v.shape[0]))[None, :]

    # One lane-dense slab holding every parameter (single input DMA).
    params = jnp.concatenate([
        pad_rc(w_cat),            # rows   0.. 63 : fused QKV weight
        pad_rc(out_proj_w.T),     # rows  64.. 95 : out-proj weight (in, out)
        pad_rc(w1.T),             # rows  96..127 : linear1 weight (E, F)
        pad_rc(w2.T),             # rows 128..191 : linear2 weight (F, E)
        row_vec(bq, bk, bv),      # row 192 : [bq|bk|bv]
        row_vec(out_proj_b),      # row 193
        row_vec(b1),              # row 194
        row_vec(b2),              # row 195
        row_vec(g1),              # row 196
        row_vec(be1),             # row 197
        row_vec(g2),              # row 198
        row_vec(be2),             # row 199
    ], axis=0)                    # (200, 128)
    assert params.shape == (PARAM_ROWS, PARAM_WIDTH)

    return torch_params, params


# --------------------------- plain-JAX reference ---------------------------
def reference_forward(src, pos, P):
    L, N, E = src.shape
    lin = lambda x, W, b: x @ W.T + b
    qk = src + pos
    q = lin(qk, P['wq'], P['bq'])
    k = lin(qk, P['wk'], P['bk'])
    v = lin(src, P['wv'], P['bv'])
    qh = q.reshape(L, N, NHEAD, HEAD_DIM)
    kh = k.reshape(L, N, NHEAD, HEAD_DIM)
    vh = v.reshape(L, N, NHEAD, HEAD_DIM)
    scale = 1.0 / (HEAD_DIM ** 0.5)
    scores = jnp.einsum('lnhd,mnhd->nhlm', qh * scale, kh)
    attn = jax.nn.softmax(scores, axis=-1)
    o = jnp.einsum('nhlm,mnhd->lnhd', attn, vh).reshape(L, N, E)
    o = lin(o, P['wo'], P['bo'])

    def layernorm(x, g, b):
        mu = jnp.mean(x, axis=-1, keepdims=True)
        var = jnp.mean((x - mu) ** 2, axis=-1, keepdims=True)
        return (x - mu) * jax.lax.rsqrt(var + LN_EPS) * g + b

    x = layernorm(src + o, P['g1'], P['be1'])
    ff = lin(jnp.maximum(lin(x, P['w1'], P['b1']), 0.0), P['w2'], P['b2'])
    return layernorm(x + ff, P['g2'], P['be2'])


if __name__ == "__main__":
    key = jax.random.PRNGKey(0)
    k_src, k_pos, k_par = jax.random.split(key, 3)

    src = jax.random.normal(k_src, (SEQ_LEN, BATCH, D_MODEL), jnp.float32)
    pos = jax.random.normal(k_pos, (SEQ_LEN, BATCH, D_MODEL), jnp.float32)

    torch_params, kernel_params = make_params(k_par)

    out = transformer_encoder_layer(src, pos, kernel_params)
    out = jax.block_until_ready(out)

    ref = reference_forward(src, pos, torch_params)
    assert out.shape == (SEQ_LEN, BATCH, D_MODEL)
    assert jnp.allclose(out, ref, atol=1e-4, rtol=1e-4), \
        f"max abs err = {jnp.max(jnp.abs(out - ref))}"

    print("KERNEL_OK")
</pallas_src>

<mosaic_0001>
module attributes {stable_mosaic.version = 11 : i64} {
  func.func @encoder_layer_kernel(%arg0: i32, %arg1: memref<16x64xf32, #tpu.memory_space<vmem>>, %arg2: memref<200x128xf32, #tpu.memory_space<vmem>>, %arg3: memref<16x32xf32, #tpu.memory_space<vmem>>) attributes {dimension_semantics = [#tpu.dimension_semantics<arbitrary>], iteration_bounds = array<i64: 1>, scalar_prefetch = 0 : i64, scratch_operands = 0 : i64, tpu.core_type = #tpu.core_type<tc>, window_params = [{pipeline_mode = #tpu.pipeline_mode<synchronous>, transform_indices = @transform_0, window_bounds = array<i64: 16, 64>}, {pipeline_mode = #tpu.pipeline_mode<synchronous>, transform_indices = @transform_1, window_bounds = array<i64: 200, 128>}, {pipeline_mode = #tpu.pipeline_mode<synchronous>, transform_indices = @transform_2, window_bounds = array<i64: 16, 32>}]} {
    %c0 = arith.constant 0 : index
    %c0_0 = arith.constant 0 : index
    %0 = vector.load %arg1[%c0, %c0_0] : memref<16x64xf32, #tpu.memory_space<vmem>>, vector<16x64xf32>
    %1 = vector.extract_strided_slice %0 {offsets = [0, 0], sizes = [16, 32], strides = [1, 1]} : vector<16x64xf32> to vector<16x32xf32>
    %c192 = arith.constant 192 : index
    %c0_1 = arith.constant 0 : index
    %2 = vector.load %arg2[%c192, %c0_1] : memref<200x128xf32, #tpu.memory_space<vmem>>, vector<8x128xf32>
    %3 = vector.extract_strided_slice %2 {offsets = [0, 0], sizes = [1, 96], strides = [1, 1]} : vector<8x128xf32> to vector<1x96xf32>
    %4 = vector.extract_strided_slice %2 {offsets = [1, 0], sizes = [1, 32], strides = [1, 1]} : vector<8x128xf32> to vector<1x32xf32>
    %5 = vector.extract_strided_slice %2 {offsets = [2, 0], sizes = [1, 64], strides = [1, 1]} : vector<8x128xf32> to vector<1x64xf32>
    %6 = vector.extract_strided_slice %2 {offsets = [3, 0], sizes = [1, 32], strides = [1, 1]} : vector<8x128xf32> to vector<1x32xf32>
    %7 = vector.extract_strided_slice %2 {offsets = [4, 0], sizes = [1, 32], strides = [1, 1]} : vector<8x128xf32> to vector<1x32xf32>
    %8 = vector.extract_strided_slice %2 {offsets = [5, 0], sizes = [1, 32], strides = [1, 1]} : vector<8x128xf32> to vector<1x32xf32>
    %9 = vector.extract_strided_slice %2 {offsets = [6, 0], sizes = [1, 32], strides = [1, 1]} : vector<8x128xf32> to vector<1x32xf32>
    %10 = vector.extract_strided_slice %2 {offsets = [7, 0], sizes = [1, 32], strides = [1, 1]} : vector<8x128xf32> to vector<1x32xf32>
    %c0_2 = arith.constant 0 : index
    %c0_3 = arith.constant 0 : index
    %11 = vector.load %arg2[%c0_2, %c0_3] : memref<200x128xf32, #tpu.memory_space<vmem>>, vector<64x96xf32>
    %cst = arith.constant dense<0.000000e+00> : vector<16x96xf32>
    %12 = tpu.matmul %0, %11, %cst {dimension_numbers = #tpu.dot_dimension_numbers<[1], [0], [0], [1], [0, 0, 1, 1], [], []>} : vector<16x64xf32>, vector<64x96xf32>, vector<16x96xf32> -> vector<16x96xf32>
    %13 = vector.broadcast %3 : vector<1x96xf32> to vector<16x96xf32>
    %14 = arith.addf %12, %13 : vector<16x96xf32>
    %15 = vector.extract_strided_slice %14 {offsets = [0, 0], sizes = [16, 32], strides = [1, 1]} : vector<16x96xf32> to vector<16x32xf32>
    %cst_4 = arith.constant 0.353553385 : f32
    %16 = vector.broadcast %cst_4 : f32 to vector<16x32xf32>
    %17 = arith.mulf %15, %16 : vector<16x32xf32>
    %18 = vector.extract_strided_slice %14 {offsets = [0, 32], sizes = [16, 32], strides = [1, 1]} : vector<16x96xf32> to vector<16x32xf32>
    %19 = vector.extract_strided_slice %14 {offsets = [0, 64], sizes = [16, 32], strides = [1, 1]} : vector<16x96xf32> to vector<16x32xf32>
    %20 = tpu.iota {dimensions = array<i32: 0>} : vector<16x16xi32>
    %21 = tpu.iota {dimensions = array<i32: 1>} : vector<16x16xi32>
    %c2_i32 = arith.constant 2 : i32
    %c0_i32 = arith.constant 0 : i32
    %22 = arith.cmpi eq, %c2_i32, %c0_i32 : i32
    %c1_i32 = arith.constant 1 : i32
    %23 = arith.select %22, %c1_i32, %c2_i32 : i32
    %24 = vector.broadcast %23 : i32 to vector<16x16xi32>
    %25 = arith.remsi %20, %24 : vector<16x16xi32>
    %c0_i32_5 = arith.constant 0 : i32
    %26 = vector.broadcast %c0_i32_5 : i32 to vector<16x16xi32>
    %27 = arith.cmpi ne, %25, %26 : vector<16x16xi32>
    %c0_i32_6 = arith.constant 0 : i32
    %28 = vector.broadcast %c0_i32_6 : i32 to vector<16x16xi32>
    %29 = arith.cmpi slt, %25, %28 : vector<16x16xi32>
    %c0_i32_7 = arith.constant 0 : i32
    %30 = arith.cmpi slt, %23, %c0_i32_7 : i32
    %31 = vector.broadcast %30 : i1 to vector<16x16xi1>
    %32 = vector.broadcast %31 : vector<16x16xi1> to vector<16x16xi1>
    %33 = arith.xori %29, %32 : vector<16x16xi1>
    %34 = arith.andi %33, %27 : vector<16x16xi1>
    %35 = vector.broadcast %23 : i32 to vector<16x16xi32>
    %36 = arith.addi %25, %35 : vector<16x16xi32>
    %37 = arith.select %34, %36, %25 : vector<16x16xi1>, vector<16x16xi32>
    %c2_i32_8 = arith.constant 2 : i32
    %c0_i32_9 = arith.constant 0 : i32
    %38 = arith.cmpi eq, %c2_i32_8, %c0_i32_9 : i32
    %c1_i32_10 = arith.constant 1 : i32
    %39 = arith.select %38, %c1_i32_10, %c2_i32_8 : i32
    %40 = vector.broadcast %39 : i32 to vector<16x16xi32>
    %41 = arith.remsi %21, %40 : vector<16x16xi32>
    %c0_i32_11 = arith.constant 0 : i32
    %42 = vector.broadcast %c0_i32_11 : i32 to vector<16x16xi32>
    %43 = arith.cmpi ne, %41, %42 : vector<16x16xi32>
    %c0_i32_12 = arith.constant 0 : i32
    %44 = vector.broadcast %c0_i32_12 : i32 to vector<16x16xi32>
    %45 = arith.cmpi slt, %41, %44 : vector<16x16xi32>
    %c0_i32_13 = arith.constant 0 : i32
    %46 = arith.cmpi slt, %39, %c0_i32_13 : i32
    %47 = vector.broadcast %46 : i1 to vector<16x16xi1>
    %48 = vector.broadcast %47 : vector<16x16xi1> to vector<16x16xi1>
    %49 = arith.xori %45, %48 : vector<16x16xi1>
    %50 = arith.andi %49, %43 : vector<16x16xi1>
    %51 = vector.broadcast %39 : i32 to vector<16x16xi32>
    %52 = arith.addi %41, %51 : vector<16x16xi32>
    %53 = arith.select %50, %52, %41 : vector<16x16xi1>, vector<16x16xi32>
    %54 = arith.cmpi eq, %37, %53 : vector<16x16xi32>
    %c64 = arith.constant 64 : index
    %c0_14 = arith.constant 0 : index
    %55 = vector.load %arg2[%c64, %c0_14] : memref<200x128xf32, #tpu.memory_space<vmem>>, vector<32x32xf32>
    %cst_15 = arith.constant 0.000000e+00 : f32
    %56 = vector.broadcast %cst_15 : f32 to vector<16x32xf32>
    %57 = vector.extract_strided_slice %17 {offsets = [0, 0], sizes = [16, 8], strides = [1, 1]} : vector<16x32xf32> to vector<16x8xf32>
    %58 = vector.extract_strided_slice %18 {offsets = [0, 0], sizes = [16, 8], strides = [1, 1]} : vector<16x32xf32> to vector<16x8xf32>
    %59 = vector.extract_strided_slice %19 {offsets = [0, 0], sizes = [16, 8], strides = [1, 1]} : vector<16x32xf32> to vector<16x8xf32>
    %cst_16 = arith.constant dense<0.000000e+00> : vector<16x16xf32>
    %60 = tpu.matmul %57, %58, %cst_16 {dimension_numbers = #tpu.dot_dimension_numbers<[1], [1], [0], [0], [0, 0, 1, 0], [], []>} : vector<16x8xf32>, vector<16x8xf32>, vector<16x16xf32> -> vector<16x16xf32>
    %cst_17 = arith.constant dense<0xFF800000> : vector<16xf32>
    %61 = vector.multi_reduction <maximumf>, %60, %cst_17 [1] : vector<16x16xf32> to vector<16xf32>
    %62 = vector.shape_cast %61 : vector<16xf32> to vector<16x1xf32>
    %63 = vector.broadcast %62 : vector<16x1xf32> to vector<16x16xf32>
    %64 = arith.subf %60, %63 : vector<16x16xf32>
    %65 = math.exp %64 : vector<16x16xf32>
    %cst_18 = arith.constant 0.000000e+00 : f32
    %66 = vector.broadcast %cst_18 : f32 to vector<16x16xf32>
    %67 = arith.select %54, %65, %66 : vector<16x16xi1>, vector<16x16xf32>
    %cst_19 = arith.constant dense<0.000000e+00> : vector<16xf32>
    %68 = vector.multi_reduction <add>, %67, %cst_19 [1] : vector<16x16xf32> to vector<16xf32>
    %69 = vector.shape_cast %68 : vector<16xf32> to vector<16x1xf32>
    %70 = tpu.reciprocal %69 : vector<16x1xf32> -> vector<16x1xf32>
    %71 = vector.broadcast %70 : vector<16x1xf32> to vector<16x16xf32>
    %72 = arith.mulf %67, %71 : vector<16x16xf32>
    %cst_20 = arith.constant dense<0.000000e+00> : vector<16x8xf32>
    %73 = tpu.matmul %72, %59, %cst_20 {dimension_numbers = #tpu.dot_dimension_numbers<[1], [0], [0], [1], [0, 0, 1, 1], [], []>} : vector<16x16xf32>, vector<16x8xf32>, vector<16x8xf32> -> vector<16x8xf32>
    %74 = vector.extract_strided_slice %55 {offsets = [0, 0], sizes = [8, 32], strides = [1, 1]} : vector<32x32xf32> to vector<8x32xf32>
    %cst_21 = arith.constant dense<0.000000e+00> : vector<16x32xf32>
    %75 = tpu.matmul %73, %74, %cst_21 {dimension_numbers = #tpu.dot_dimension_numbers<[1], [0], [0], [1], [0, 0, 1, 1], [], []>} : vector<16x8xf32>, vector<8x32xf32>, vector<16x32xf32> -> vector<16x32xf32>
    %76 = arith.addf %56, %75 : vector<16x32xf32>
    %77 = vector.extract_strided_slice %17 {offsets = [0, 8], sizes = [16, 8], strides = [1, 1]} : vector<16x32xf32> to vector<16x8xf32>
    %78 = vector.extract_strided_slice %18 {offsets = [0, 8], sizes = [16, 8], strides = [1, 1]} : vector<16x32xf32> to vector<16x8xf32>
    %79 = vector.extract_strided_slice %19 {offsets = [0, 8], sizes = [16, 8], strides = [1, 1]} : vector<16x32xf32> to vector<16x8xf32>
    %cst_22 = arith.constant dense<0.000000e+00> : vector<16x16xf32>
    %80 = tpu.matmul %77, %78, %cst_22 {dimension_numbers = #tpu.dot_dimension_numbers<[1], [1], [0], [0], [0, 0, 1, 0], [], []>} : vector<16x8xf32>, vector<16x8xf32>, vector<16x16xf32> -> vector<16x16xf32>
    %cst_23 = arith.constant dense<0xFF800000> : vector<16xf32>
    %81 = vector.multi_reduction <maximumf>, %80, %cst_23 [1] : vector<16x16xf32> to vector<16xf32>
    %82 = vector.shape_cast %81 : vector<16xf32> to vector<16x1xf32>
    %83 = vector.broadcast %82 : vector<16x1xf32> to vector<16x16xf32>
    %84 = arith.subf %80, %83 : vector<16x16xf32>
    %85 = math.exp %84 : vector<16x16xf32>
    %cst_24 = arith.constant 0.000000e+00 : f32
    %86 = vector.broadcast %cst_24 : f32 to vector<16x16xf32>
    %87 = arith.select %54, %85, %86 : vector<16x16xi1>, vector<16x16xf32>
    %cst_25 = arith.constant dense<0.000000e+00> : vector<16xf32>
    %88 = vector.multi_reduction <add>, %87, %cst_25 [1] : vector<16x16xf32> to vector<16xf32>
    %89 = vector.shape_cast %88 : vector<16xf32> to vector<16x1xf32>
    %90 = tpu.reciprocal %89 : vector<16x1xf32> -> vector<16x1xf32>
    %91 = vector.broadcast %90 : vector<16x1xf32> to vector<16x16xf32>
    %92 = arith.mulf %87, %91 : vector<16x16xf32>
    %cst_26 = arith.constant dense<0.000000e+00> : vector<16x8xf32>
    %93 = tpu.matmul %92, %79, %cst_26 {dimension_numbers = #tpu.dot_dimension_numbers<[1], [0], [0], [1], [0, 0, 1, 1], [], []>} : vector<16x16xf32>, vector<16x8xf32>, vector<16x8xf32> -> vector<16x8xf32>
    %94 = vector.extract_strided_slice %55 {offsets = [8, 0], sizes = [8, 32], strides = [1, 1]} : vector<32x32xf32> to vector<8x32xf32>
    %cst_27 = arith.constant dense<0.000000e+00> : vector<16x32xf32>
    %95 = tpu.matmul %93, %94, %cst_27 {dimension_numbers = #tpu.dot_dimension_numbers<[1], [0], [0], [1], [0, 0, 1, 1], [], []>} : vector<16x8xf32>, vector<8x32xf32>, vector<16x32xf32> -> vector<16x32xf32>
    %96 = arith.addf %76, %95 : vector<16x32xf32>
    %97 = vector.extract_strided_slice %17 {offsets = [0, 16], sizes = [16, 8], strides = [1, 1]} : vector<16x32xf32> to vector<16x8xf32>
    %98 = vector.extract_strided_slice %18 {offsets = [0, 16], sizes = [16, 8], strides = [1, 1]} : vector<16x32xf32> to vector<16x8xf32>
    %99 = vector.extract_strided_slice %19 {offsets = [0, 16], sizes = [16, 8], strides = [1, 1]} : vector<16x32xf32> to vector<16x8xf32>
    %cst_28 = arith.constant dense<0.000000e+00> : vector<16x16xf32>
    %100 = tpu.matmul %97, %98, %cst_28 {dimension_numbers = #tpu.dot_dimension_numbers<[1], [1], [0], [0], [0, 0, 1, 0], [], []>} : vector<16x8xf32>, vector<16x8xf32>, vector<16x16xf32> -> vector<16x16xf32>
    %cst_29 = arith.constant dense<0xFF800000> : vector<16xf32>
    %101 = vector.multi_reduction <maximumf>, %100, %cst_29 [1] : vector<16x16xf32> to vector<16xf32>
    %102 = vector.shape_cast %101 : vector<16xf32> to vector<16x1xf32>
    %103 = vector.broadcast %102 : vector<16x1xf32> to vector<16x16xf32>
    %104 = arith.subf %100, %103 : vector<16x16xf32>
    %105 = math.exp %104 : vector<16x16xf32>
    %cst_30 = arith.constant 0.000000e+00 : f32
    %106 = vector.broadcast %cst_30 : f32 to vector<16x16xf32>
    %107 = arith.select %54, %105, %106 : vector<16x16xi1>, vector<16x16xf32>
    %cst_31 = arith.constant dense<0.000000e+00> : vector<16xf32>
    %108 = vector.multi_reduction <add>, %107, %cst_31 [1] : vector<16x16xf32> to vector<16xf32>
    %109 = vector.shape_cast %108 : vector<16xf32> to vector<16x1xf32>
    %110 = tpu.reciprocal %109 : vector<16x1xf32> -> vector<16x1xf32>
    %111 = vector.broadcast %110 : vector<16x1xf32> to vector<16x16xf32>
    %112 = arith.mulf %107, %111 : vector<16x16xf32>
    %cst_32 = arith.constant dense<0.000000e+00> : vector<16x8xf32>
    %113 = tpu.matmul %112, %99, %cst_32 {dimension_numbers = #tpu.dot_dimension_numbers<[1], [0], [0], [1], [0, 0, 1, 1], [], []>} : vector<16x16xf32>, vector<16x8xf32>, vector<16x8xf32> -> vector<16x8xf32>
    %114 = vector.extract_strided_slice %55 {offsets = [16, 0], sizes = [8, 32], strides = [1, 1]} : vector<32x32xf32> to vector<8x32xf32>
    %cst_33 = arith.constant dense<0.000000e+00> : vector<16x32xf32>
    %115 = tpu.matmul %113, %114, %cst_33 {dimension_numbers = #tpu.dot_dimension_numbers<[1], [0], [0], [1], [0, 0, 1, 1], [], []>} : vector<16x8xf32>, vector<8x32xf32>, vector<16x32xf32> -> vector<16x32xf32>
    %116 = arith.addf %96, %115 : vector<16x32xf32>
    %117 = vector.extract_strided_slice %17 {offsets = [0, 24], sizes = [16, 8], strides = [1, 1]} : vector<16x32xf32> to vector<16x8xf32>
    %118 = vector.extract_strided_slice %18 {offsets = [0, 24], sizes = [16, 8], strides = [1, 1]} : vector<16x32xf32> to vector<16x8xf32>
    %119 = vector.extract_strided_slice %19 {offsets = [0, 24], sizes = [16, 8], strides = [1, 1]} : vector<16x32xf32> to vector<16x8xf32>
    %cst_34 = arith.constant dense<0.000000e+00> : vector<16x16xf32>
    %120 = tpu.matmul %117, %118, %cst_34 {dimension_numbers = #tpu.dot_dimension_numbers<[1], [1], [0], [0], [0, 0, 1, 0], [], []>} : vector<16x8xf32>, vector<16x8xf32>, vector<16x16xf32> -> vector<16x16xf32>
    %cst_35 = arith.constant dense<0xFF800000> : vector<16xf32>
    %121 = vector.multi_reduction <maximumf>, %120, %cst_35 [1] : vector<16x16xf32> to vector<16xf32>
    %122 = vector.shape_cast %121 : vector<16xf32> to vector<16x1xf32>
    %123 = vector.broadcast %122 : vector<16x1xf32> to vector<16x16xf32>
    %124 = arith.subf %120, %123 : vector<16x16xf32>
    %125 = math.exp %124 : vector<16x16xf32>
    %cst_36 = arith.constant 0.000000e+00 : f32
    %126 = vector.broadcast %cst_36 : f32 to vector<16x16xf32>
    %127 = arith.select %54, %125, %126 : vector<16x16xi1>, vector<16x16xf32>
    %cst_37 = arith.constant dense<0.000000e+00> : vector<16xf32>
    %128 = vector.multi_reduction <add>, %127, %cst_37 [1] : vector<16x16xf32> to vector<16xf32>
    %129 = vector.shape_cast %128 : vector<16xf32> to vector<16x1xf32>
    %130 = tpu.reciprocal %129 : vector<16x1xf32> -> vector<16x1xf32>
    %131 = vector.broadcast %130 : vector<16x1xf32> to vector<16x16xf32>
    %132 = arith.mulf %127, %131 : vector<16x16xf32>
    %cst_38 = arith.constant dense<0.000000e+00> : vector<16x8xf32>
    %133 = tpu.matmul %132, %119, %cst_38 {dimension_numbers = #tpu.dot_dimension_numbers<[1], [0], [0], [1], [0, 0, 1, 1], [], []>} : vector<16x16xf32>, vector<16x8xf32>, vector<16x8xf32> -> vector<16x8xf32>
    %134 = vector.extract_strided_slice %55 {offsets = [24, 0], sizes = [8, 32], strides = [1, 1]} : vector<32x32xf32> to vector<8x32xf32>
    %cst_39 = arith.constant dense<0.000000e+00> : vector<16x32xf32>
    %135 = tpu.matmul %133, %134, %cst_39 {dimension_numbers = #tpu.dot_dimension_numbers<[1], [0], [0], [1], [0, 0, 1, 1], [], []>} : vector<16x8xf32>, vector<8x32xf32>, vector<16x32xf32> -> vector<16x32xf32>
    %136 = arith.addf %116, %135 : vector<16x32xf32>
    %137 = vector.broadcast %4 : vector<1x32xf32> to vector<16x32xf32>
    %138 = arith.addf %136, %137 : vector<16x32xf32>
    %139 = arith.addf %1, %138 : vector<16x32xf32>
    %cst_40 = arith.constant dense<0.000000e+00> : vector<16xf32>
    %140 = vector.multi_reduction <add>, %139, %cst_40 [1] : vector<16x32xf32> to vector<16xf32>
    %141 = vector.shape_cast %140 : vector<16xf32> to vector<16x1xf32>
    %cst_41 = arith.constant 3.200000e+01 : f32
    %142 = vector.broadcast %cst_41 : f32 to vector<16x1xf32>
    %143 = arith.divf %141, %142 : vector<16x1xf32>
    %144 = vector.broadcast %143 : vector<16x1xf32> to vector<16x32xf32>
    %145 = arith.subf %139, %144 : vector<16x32xf32>
    %146 = arith.mulf %145, %145 : vector<16x32xf32>
    %cst_42 = arith.constant dense<0.000000e+00> : vector<16xf32>
    %147 = vector.multi_reduction <add>, %146, %cst_42 [1] : vector<16x32xf32> to vector<16xf32>
    %148 = vector.shape_cast %147 : vector<16xf32> to vector<16x1xf32>
    %cst_43 = arith.constant 3.200000e+01 : f32
    %149 = vector.broadcast %cst_43 : f32 to vector<16x1xf32>
    %150 = arith.divf %148, %149 : vector<16x1xf32>
    %151 = vector.broadcast %143 : vector<16x1xf32> to vector<16x32xf32>
    %152 = arith.subf %139, %151 : vector<16x32xf32>
    %cst_44 = arith.constant 9.99999974E-6 : f32
    %153 = vector.broadcast %cst_44 : f32 to vector<16x1xf32>
    %154 = arith.addf %150, %153 : vector<16x1xf32>
    %155 = math.rsqrt %154 : vector<16x1xf32>
    %156 = vector.broadcast %155 : vector<16x1xf32> to vector<16x32xf32>
    %157 = arith.mulf %152, %156 : vector<16x32xf32>
    %158 = vector.broadcast %7 : vector<1x32xf32> to vector<16x32xf32>
    %159 = arith.mulf %157, %158 : vector<16x32xf32>
    %160 = vector.broadcast %8 : vector<1x32xf32> to vector<16x32xf32>
    %161 = arith.addf %159, %160 : vector<16x32xf32>
    %c96 = arith.constant 96 : index
    %c0_45 = arith.constant 0 : index
    %162 = vector.load %arg2[%c96, %c0_45] : memref<200x128xf32, #tpu.memory_space<vmem>>, vector<32x64xf32>
    %c128 = arith.constant 128 : index
    %c0_46 = arith.constant 0 : index
    %163 = vector.load %arg2[%c128, %c0_46] : memref<200x128xf32, #tpu.memory_space<vmem>>, vector<64x32xf32>
    %cst_47 = arith.constant dense<0.000000e+00> : vector<16x64xf32>
    %164 = tpu.matmul %161, %162, %cst_47 {dimension_numbers = #tpu.dot_dimension_numbers<[1], [0], [0], [1], [0, 0, 1, 1], [], []>} : vector<16x32xf32>, vector<32x64xf32>, vector<16x64xf32> -> vector<16x64xf32>
    %165 = vector.broadcast %5 : vector<1x64xf32> to vector<16x64xf32>
    %166 = arith.addf %164, %165 : vector<16x64xf32>
    %cst_48 = arith.constant 0.000000e+00 : f32
    %167 = vector.broadcast %cst_48 : f32 to vector<16x64xf32>
    %168 = arith.maximumf %166, %167 : vector<16x64xf32>
    %cst_49 = arith.constant dense<0.000000e+00> : vector<16x32xf32>
    %169 = tpu.matmul %168, %163, %cst_49 {dimension_numbers = #tpu.dot_dimension_numbers<[1], [0], [0], [1], [0, 0, 1, 1], [], []>} : vector<16x64xf32>, vector<64x32xf32>, vector<16x32xf32> -> vector<16x32xf32>
    %170 = vector.broadcast %6 : vector<1x32xf32> to vector<16x32xf32>
    %171 = arith.addf %169, %170 : vector<16x32xf32>
    %172 = arith.addf %161, %171 : vector<16x32xf32>
    %cst_50 = arith.constant dense<0.000000e+00> : vector<16xf32>
    %173 = vector.multi_reduction <add>, %172, %cst_50 [1] : vector<16x32xf32> to vector<16xf32>
    %174 = vector.shape_cast %173 : vector<16xf32> to vector<16x1xf32>
    %cst_51 = arith.constant 3.200000e+01 : f32
    %175 = vector.broadcast %cst_51 : f32 to vector<16x1xf32>
    %176 = arith.divf %174, %175 : vector<16x1xf32>
    %177 = vector.broadcast %176 : vector<16x1xf32> to vector<16x32xf32>
    %178 = arith.subf %172, %177 : vector<16x32xf32>
    %179 = arith.mulf %178, %178 : vector<16x32xf32>
    %cst_52 = arith.constant dense<0.000000e+00> : vector<16xf32>
    %180 = vector.multi_reduction <add>, %179, %cst_52 [1] : vector<16x32xf32> to vector<16xf32>
    %181 = vector.shape_cast %180 : vector<16xf32> to vector<16x1xf32>
    %cst_53 = arith.constant 3.200000e+01 : f32
    %182 = vector.broadcast %cst_53 : f32 to vector<16x1xf32>
    %183 = arith.divf %181, %182 : vector<16x1xf32>
    %184 = vector.broadcast %176 : vector<16x1xf32> to vector<16x32xf32>
    %185 = arith.subf %172, %184 : vector<16x32xf32>
    %cst_54 = arith.constant 9.99999974E-6 : f32
    %186 = vector.broadcast %cst_54 : f32 to vector<16x1xf32>
    %187 = arith.addf %183, %186 : vector<16x1xf32>
    %188 = math.rsqrt %187 : vector<16x1xf32>
    %189 = vector.broadcast %188 : vector<16x1xf32> to vector<16x32xf32>
    %190 = arith.mulf %185, %189 : vector<16x32xf32>
    %191 = vector.broadcast %9 : vector<1x32xf32> to vector<16x32xf32>
    %192 = arith.mulf %190, %191 : vector<16x32xf32>
    %193 = vector.broadcast %10 : vector<1x32xf32> to vector<16x32xf32>
    %194 = arith.addf %192, %193 : vector<16x32xf32>
    %c0_55 = arith.constant 0 : index
    %c0_56 = arith.constant 0 : index
    %195 = vector.load %arg3[%c0_55, %c0_56] : memref<16x32xf32, #tpu.memory_space<vmem>>, vector<16x32xf32>
    tpu.vector_store %arg3[%c0_55, %c0_56], %194 {strides = array<i32>} : memref<16x32xf32, #tpu.memory_space<vmem>>, vector<16x32xf32>,
    return
  }
  func.func @transform_0(%arg0: i32) -> (i32, i32) {
    %c0_i32 = arith.constant 0 : i32
    %c0_i32_0 = arith.constant 0 : i32
    %c0_i32_1 = arith.constant 0 : i32
    return %c0_i32, %c0_i32_0 : i32, i32
  }
  func.func @transform_1(%arg0: i32) -> (i32, i32) {
    %c0_i32 = arith.constant 0 : i32
    %c0_i32_0 = arith.constant 0 : i32
    %c0_i32_1 = arith.constant 0 : i32
    return %c0_i32, %c0_i32_0 : i32, i32
  }
  func.func @transform_2(%arg0: i32) -> (i32, i32) {
    %c0_i32 = arith.constant 0 : i32
    %c0_i32_0 = arith.constant 0 : i32
    %c0_i32_1 = arith.constant 0 : i32
    return %c0_i32, %c0_i32_0 : i32, i32
  }
}

</mosaic_0001>

<bundles_post_ra>
// kernel: tpu_custom_call.1
= control target key start
LH: loop header
LB: loop body
LE: loop exit
PB: predicated region body
PF: predicated region fallthrough
CT: control target
= control target key end

     0   :  { %7 = vsyncpa [#allocation3], 0  ;;  %s2341_s0 = inlined_call_operand.hbm [shape: f32[16,64], index: 0, kind: input, shape index: {}]   ;;  %s2342_s1 = inlined_call_operand.hbm [shape: f32[200,128], index: 1, kind: input, shape index: {}]   ;;  %s2343_s2 = inlined_call_operand.hbm [shape: f32[16,32], index: 2, kind: output, shape index: {}]  }
   0x1   :  { %8 = vsyncpa [#allocation6], 0 }
   0x2   :  { %9 = vsyncpa [#allocation4], 0  ;;  %s2103_s9 = smov [#allocation2]   ;;  %s2031_s13 = scalar_lea.hbm %s2341_s0, 256 }
   0x3   :  { %s15_s10 = sshll.u32 %s2103_s9, 4  ;;  %p2032_p0 = scmp.ne.s32.totalorder %s2341_s0, %s2031_s13  ;;  %s16_s10 = int_to_ptr.vmem [resolvable:$true] %s15_s10 }
   0x4   :  { %p2035_p1 = scmp.lt.u32.totalorder %s2031_s13, %s2341_s0 }
   0x6   :  { %p2037_p2 = pnand %p2035_p1, %p2032_p0 }
   0x8   :  { %2040 = shalt.err (!%p2037_p2)
}
   0x9   :  { %s2041_s18 = scalar_lea.vmem %s16_s10, 256  ;;  %p2046_p4 = scmp.lt.s32.totalorder %s16_s10, %s16_s10 }
   0xa   :  { %p2042_p3 = scmp.ne.s32.totalorder %s16_s10, %s2041_s18  ;;  %p2047_p5 = scmp.lt.s32.totalorder %s2041_s18, %s2041_s18 }
   0xc   :  { %p2048_p6 = por %p2047_p5, %p2046_p4 }
   0xe   :  { %p2049_p7 = pnand %p2048_p6, %p2042_p3 }
  0x10   :  { %2052 = shalt.err (!%p2049_p7)
}
  0x11   :  { %s2104_s19 = smov 128   ;;  %s2105_s20 = smov 8  }
  0x12   :  { %21 = dma.hbm_to_vmem [thread:$0]  %s2341_s0, 256, %s16_s10, [#allocation3], %s2104_s19, %s2104_s19, %s2105_s20  }
  0x13   :  { %s2106_s23 = smov [#allocation5]   ;;  %s2053_s27 = scalar_lea.hbm %s2342_s1, 3200 }
  0x14   :  { %s27_s24 = sshll.u32 %s2106_s23, 4  ;;  %p2054_p8 = scmp.ne.s32.totalorder %s2342_s1, %s2053_s27  ;;  %s28_s24 = int_to_ptr.vmem [resolvable:$true] %s27_s24 }
  0x15   :  { %p2057_p9 = scmp.lt.u32.totalorder %s2053_s27, %s2342_s1 }
  0x17   :  { %p2059_p10 = pnand %p2057_p9, %p2054_p8 }
  0x19   :  { %2062 = shalt.err (!%p2059_p10)
}
  0x1a   :  { %s2063_s4 = scalar_lea.vmem %s28_s24, 3200  ;;  %p2068_p12 = scmp.lt.s32.totalorder %s28_s24, %s28_s24 }
  0x1b   :  { %p2064_p11 = scmp.ne.s32.totalorder %s28_s24, %s2063_s4  ;;  %p2069_p13 = scmp.lt.s32.totalorder %s2063_s4, %s2063_s4 }
  0x1d   :  { %p2070_p0 = por %p2069_p13, %p2068_p12 }
  0x1f   :  { %p2071_p1 = pnand %p2070_p0, %p2064_p11 }
  0x21   :  { %2074 = shalt.err (!%p2071_p1)
}
  0x22   :  { %33 = dma.hbm_to_vmem [thread:$0]  %s2342_s1, 3200, %s28_s24, [#allocation6], %s2104_s19, %s2104_s19, %s2105_s20  }
  0x23   :  { %2097 = dma.done.wait [#allocation3], 256  }
  0x24   :  { %2098 = vsyncadd [#allocation3], 4294967040 }
  0x25   :  { %2099 = dma.done.wait [#allocation6], 3200  }
  0x26   :  { %2100 = vsyncadd [#allocation6], 4294964096  ;;  %v43_v0 = vld [vmem:[#allocation5] sm:$0xff]  ;;  %v44_v1 = vld [vmem:[#allocation5 + $0x8] sm:$0xff]  ;;  %vm55_vm0 = vcmask 523264   ;;  %v51_v14 = vlaneseq  ;;  %vm192_vm1 = vcmask 64512  }
  0x27   :  { %v45_v2 = vld [vmem:[#allocation5 + $0x10] sm:$0xff]  ;;  %v1849_v3 = vpack.c.bf16 %v44_v1, %v43_v0  ;;  %v46_v4 = vld [vmem:[#allocation5 + $0x18] sm:$0xff]  ;;  %v47_v6 = vld [vmem:[#allocation5 + $0x20] sm:$0xff]  ;;  %s2107_s1 = smov 96   ;;  %vm278_vm3 = vcmask 130048   ;;  %s2108_s6 = smov 64  }
  0x28   :  { %v1853_v5 = vpack.c.bf16 %v46_v4, %v45_v2  ;;  %v48_v7 = vld [vmem:[#allocation5 + $0x28] sm:$0xff]  ;;  %v2164_v8 = vld [vmem:[#allocation2] sm:$0xff]  ;;  %v50_v11 = vld [vmem:[#allocation5 + $0x38] sm:$0xff]  ;;  %v2172_v15 = vshrl.u32 %v51_v14, 7  ;;  %s2109_s7 = smov 88   ;;  %s2110_s8 = smov 120  }
  0x29   :  { %1850 = vmatprep.subr.bf16.mxu0 %v1849_v3  ;;  %1740 = vmatprep.mubr.msk.f32.mxu0 %vm55_vm0, %v2164_v8  ;;  %v1857_v9 = vpack.c.bf16 %v48_v7, %v47_v6  ;;  %v49_v10 = vld [vmem:[#allocation5 + $0x30] sm:$0xff]  ;;  %v2168_v13 = vld [vmem:[#allocation2 + $0x8] sm:$0xff]  ;;  %v2175_v17 = vld [vmem:[#allocation5 + $0xc0] sm:$0xff]  ;;  %v143_v45 = vand.u32 127, %v51_v14  ;;  %s2111_s9 = smov 80   ;;  %s2112_s10 = smov 104  }
  0x2a   :  { %1852 = vmatpush3.bf16.msra.mxu0 %v1849_v3  ;;  %v1861_v12 = vpack.c.bf16 %v50_v11, %v49_v10  ;;  %v53_v16 = vsub.s32 0, %v2172_v15  ;;  %vm2187_vm2 = vmpackc.low %vm192_vm1, %vm192_vm1  ;;  %v141_v42 = vadd.s32 8, %v2172_v15  ;;  %v148_v53 = vand.u32 1, %v2172_v15  ;;  %v182_v6 = vld [vmem:[#allocation5 + $0x40] sm:$0xff]  ;;  %s2113_s11 = smov 56   ;;  %s2114_s12 = smov 112  }
  0x2b   :  { %1854 = vmatprep.subr.bf16.mxu0 %v1853_v5  ;;  %v172_v51 = vand.u32 1, %v143_v45  ;;  %s2115_s13 = smov 72   ;;  %s2116_s14 = smov 48   ;;  %vm1332_vm6 = vcmask 261120  }
  0x2c   :  { %v54_v18 = vrot.slane %v2175_v17, %v53_v16  ;;  %v155_v50 = vand.u32 1, %v141_v42  ;;  %s2117_s15 = smov 40   ;;  %s2118_s16 = smov [#allocation7]  }
  0x2d   :  { %vm2213_vm5 = vcmp.eq.s32.totalorder %v148_v53, %v172_v51  ;;  %s1603_s17 = sshll.u32 %s2118_s16, 4  ;;  %s1604_s17 = int_to_ptr.vmem [resolvable:$true] %s1603_s17 }
  0x2e   :  { %1856 = vmatpush3.bf16.msra.mxu0 %v1853_v5  ;;  %vm2209_vm4 = vcmp.eq.s32.totalorder %v155_v50, %v172_v51  ;;  %s2075_s18 = scalar_lea.vmem %s1604_s17, 256  ;;  %p2080_p3 = scmp.lt.s32.totalorder %s1604_s17, %s1604_s17 }
  0x2f   :  { %1858 = vmatprep.subr.bf16.mxu0 %v1857_v9  ;;  %p2076_p2 = scmp.ne.s32.totalorder %s1604_s17, %s2075_s18  ;;  %p2081_p4 = scmp.lt.s32.totalorder %s2075_s18, %s2075_s18 }
  0x31   :  { %p2082_p5 = por %p2081_p4, %p2080_p3 }
  0x32   :  { %1860 = vmatpush3.bf16.msra.mxu0 %v1857_v9 }
  0x33   :  { %1862 = vmatprep.subr.bf16.mxu0 %v1861_v12  ;;  %p2083_p6 = pnand %p2082_p5, %p2076_p2 }
  0x36   :  { %1864 = vmatpush3.bf16.msra.mxu0 %v1861_v12 }
  0x37   :  { %1776 = vmatprep.subr.mxu0 %v182_v6 }
  0x39   :  { %1741 = vmatmul.mubr.msk.f32.vlgmr.msra.gmra.mrb[0].mxu0 %vm55_vm0, %v2168_v13 }
  0x3a   :  { %1777 = vmatpush3.msra.mxu0 %v182_v6 }
 0x10c   :  { %v1742_v19 = vpop.f32.mrb[0].mxu0 }
 0x10d   :  { %v134_v20 = vadd.f32 %v1742_v19, %v54_v18  ;;  %v128_v21 = vpop.f32.mrb[1].mxu0 }
 0x10e   :  { %v129_v22 = vadd.f32 %v128_v21, %v54_v18 }
 0x10f   :  { %v2195_v30 = vmul.f32 0.35355338, %v134_v20 }
 0x110   :  { %v2178_v23 = vpack.i.bf16 %v134_v20, %v129_v22  ;;  %v2180_v24 = vmul.f32 0.35355338, %v129_v22 }
 0x112   :  { %1952 = vrot.lane.b32.xlu0 %v2178_v23, %s2107_s1  ;;  %1747 = vmatprep.mubr.msk.f32.mxu1 %vm192_vm1, %v2180_v24 }
 0x184   :  { %v1953_v25 = vpop.permute.xlu0 %1952 }
 0x185   :  { %v1955_v26 = vunpack.i.h.bf16 %v1953_v25  ;;  %v1954_v27 = vunpack.i.l.bf16 %v1953_v25 }
 0x187   :  { %v1865_v29 = vpack.c.bf16 %v1955_v26, %v1954_v27 }
 0x189   :  { %1867 = vmatprep.subr.msk.bf16.mxu1 %vm2187_vm2, %v1865_v29 }
 0x18a   :  { %1870 = vmatpush3.bf16.xpose.msk.msra.mxu1 %vm2187_vm2, %v1865_v29 }
 0x191   :  { %1748 = vmatmul.mubr.msk.f32.vlgmr.msra.gmra.mrb[0].mxu1 %vm192_vm1, %v2195_v30 }
 0x264   :  { %v1749_v31 = vpop.f32.mrb[0].mxu1 }
 0x265   :  { %v269_v32 = vpop.f32.mrb[1].mxu1  ;;  %v282_v33 = vsel %vm278_vm3, %v1749_v31, -inf }
 0x266   :  { %283 = vmax.xlane.f32.xlu1 %v282_v33  ;;  %v279_v34 = vsel %vm278_vm3, %v269_v32, -inf }
 0x267   :  { %280 = vmax.xlane.f32.xlu0 %v279_v34 }
 0x277   :  { %1957 = vrot.lane.b32.xlu1 %v2178_v23, %s2108_s6 }
 0x27b   :  { %1962 = vrot.lane.b32.xlu1 %v2178_v23, %s2109_s7 }
 0x27d   :  { %392 = vrot.lane.b32.xlu0 %v2195_v30, %s2110_s8 }
 0x2f3   :  { %v284_v35 = vpop.xlane.xlu1 %283 }
 0x2f4   :  { %v286_v36 = vsub.f32 %v1749_v31, %v284_v35  ;;  %v281_v37 = vpop.xlane.xlu0 %280 }
 0x2f5   :  { %v285_v38 = vsub.f32 %v269_v32, %v281_v37 }
 0x2f6   :  { %v289_v39 = vmul.f32 1.442695, %v286_v36 }
 0x2f7   :  { %v287_v40 = vmul.f32 1.442695, %v285_v38  ;;  %v1958_v41 = vpop.permute.xlu1 %1957 }
 0x2f8   :  { %1991 = vpow2.f32 %v289_v39  ;;  %v1960_v43 = vunpack.i.h.bf16 %v1958_v41  ;;  %v1959_v44 = vunpack.i.l.bf16 %v1958_v41  ;;  %v393_v5 = vpop.permute.xlu0 %392 }
 0x2f9   :  { %1993 = vpow2.f32 %v287_v40  ;;  %v183_v40 = vld [vmem:[#allocation5 + $0x48] sm:$0xff] }
 0x2fa   :  { %v1871_v46 = vpack.c.bf16 %v1960_v43, %v1959_v44 }
 0x2fb   :  { %v1963_v47 = vpop.permute.xlu1 %1962 }
 0x2fc   :  { %v1965_v48 = vunpack.i.h.bf16 %v1963_v47  ;;  %v1964_v49 = vunpack.i.l.bf16 %v1963_v47  ;;  %1872 = vmatprep.subr.bf16.mxu1 %v1871_v46 }
 0x2fd   :  { %1874 = vmatpush3.bf16.msra.mxu1 %v1871_v46 }
 0x2fe   :  { %v1875_v52 = vpack.c.bf16 %v1965_v48, %v1964_v49 }
 0x300   :  { %1877 = vmatprep.subr.msk.bf16.mxu1 %vm2187_vm2, %v1875_v52 }
 0x302   :  { %v1992_v55 = vpop.eup %1991 }
 0x303   :  { %v1994_v57 = vpop.eup %1993  ;;  %v292_v58 = vsel %vm2209_vm4, %v1992_v55, 0.0 }
 0x304   :  { %v296_v59 = vsel %vm278_vm3, %v292_v58, 0.0  ;;  %v291_v60 = vsel %vm2213_vm5, %v1994_v57, 0.0 }
 0x305   :  { %297 = vadd.xlane.f32.xlu1 %v296_v59  ;;  %v293_v61 = vsel %vm278_vm3, %v291_v60, 0.0 }
 0x309   :  { %294 = vadd.xlane.f32.xlu1 %v293_v61 }
 0x31a   :  { %390 = vrot.lane.b32.xlu1 %v2180_v24, %s2110_s8 }
 0x392   :  { %v298_v62 = vpop.xlane.xlu1 %297 }
 0x393   :  { %1995 = vrcp.f32 %v298_v62 }
 0x396   :  { %v295_v63 = vpop.xlane.xlu1 %294 }
 0x397   :  { %1997 = vrcp.f32 %v295_v63 }
 0x39a   :  { %v391_v4 = vpop.permute.xlu1 %390 }
 0x39d   :  { %v1996_v0 = vpop.eup %1995 }
 0x39e   :  { %v302_v3 = vmul.f32 %v1996_v0, %v292_v58 }
 0x3a1   :  { %v1998_v1 = vpop.eup %1997 }
 0x3a2   :  { %v301_v2 = vmul.f32 %v1998_v1, %v291_v60 }
 0x3a4   :  { %1754 = vmatprep.mubr.msk.f32.mxu1 %vm278_vm3, %v301_v2 }
 0x3a5   :  { %1755 = vmatmul.mubr.msk.f32.vlgmr.msra.gmra.mrb[2].mxu1 %vm278_vm3, %v302_v3 }
 0x3a6   :  { %1880 = vmatpush3.bf16.xpose.msk.msra.mxu1 %vm2187_vm2, %v1875_v52  ;;  %1761 = vmatprep.mubr.msk.f32.mxu1 %vm192_vm1, %v391_v4 }
 0x3ad   :  { %1762 = vmatmul.mubr.msk.f32.vlgmr.msra.gmra.mrb[4].mxu1 %vm192_vm1, %v393_v5 }
 0x478   :  { %v1756_v7 = vpop.f32.mrb[2].mxu1 }
 0x479   :  { %v381_v9 = vpop.f32.mrb[3].mxu1 }
 0x47a   :  { %1778 = vmatprep.mubr.msk.f32.mxu0 %vm192_vm1, %v381_v9 }
 0x47b   :  { %1779 = vmatmul.mubr.msk.f32.vlgmr.msra.gmra.mrb[2].mxu0 %vm192_vm1, %v1756_v7 }
 0x480   :  { %v1763_v10 = vpop.f32.mrb[4].mxu1 }
 0x481   :  { %v472_v11 = vpop.f32.mrb[5].mxu1  ;;  %v484_v12 = vsel %vm278_vm3, %v1763_v10, -inf }
 0x482   :  { %485 = vmax.xlane.f32.xlu0 %v484_v12  ;;  %v481_v14 = vsel %vm278_vm3, %v472_v11, -inf }
 0x483   :  { %482 = vmax.xlane.f32.xlu1 %v481_v14 }
 0x498   :  { %1972 = vrot.lane.b32.xlu0 %v2178_v23, %s2111_s9 }
 0x49c   :  { %1039 = vrot.lane.b32.xlu0 %v2180_v24, %s2112_s10 }
 0x50f   :  { %v486_v16 = vpop.xlane.xlu0 %485 }
 0x510   :  { %v488_v18 = vsub.f32 %v1763_v10, %v486_v16  ;;  %v483_v19 = vpop.xlane.xlu1 %482 }
 0x511   :  { %v487_v20 = vsub.f32 %v472_v11, %v483_v19 }
 0x512   :  { %v491_v21 = vmul.f32 1.442695, %v488_v18 }
 0x513   :  { %v489_v22 = vmul.f32 1.442695, %v487_v20  ;;  %v1973_v39 = vpop.permute.xlu0 %1972 }
 0x514   :  { %1999 = vpow2.f32 %v491_v21  ;;  %v1975_v42 = vunpack.i.h.bf16 %v1973_v39  ;;  %v1974_v43 = vunpack.i.l.bf16 %v1973_v39 }
 0x515   :  { %2001 = vpow2.f32 %v489_v22  ;;  %v184_v22 = vld [vmem:[#allocation5 + $0x50] sm:$0xff] }
 0x517   :  { %v1040_v55 = vpop.permute.xlu0 %1039 }
 0x51e   :  { %v2000_v25 = vpop.eup %1999 }
 0x51f   :  { %v2002_v26 = vpop.eup %2001  ;;  %v494_v27 = vsel %vm2209_vm4, %v2000_v25, 0.0 }
 0x520   :  { %v498_v29 = vsel %vm278_vm3, %v494_v27, 0.0  ;;  %v493_v31 = vsel %vm2213_vm5, %v2002_v26, 0.0 }
 0x521   :  { %499 = vadd.xlane.f32.xlu1 %v498_v29  ;;  %v495_v32 = vsel %vm278_vm3, %v493_v31, 0.0 }
 0x525   :  { %496 = vadd.xlane.f32.xlu1 %v495_v32 }
 0x536   :  { %1967 = vrot.lane.b32.xlu1 %v2178_v23, %s2113_s11 }
 0x53a   :  { %754 = vrot.lane.b32.xlu1 %v2180_v24, %s2114_s12 }
 0x53e   :  { %756 = vrot.lane.b32.xlu1 %v2195_v30, %s2114_s12 }
 0x542   :  { %1977 = vrot.lane.b32.xlu1 %v2178_v23, %s2115_s13 }
 0x546   :  { %1041 = vrot.lane.b32.xlu1 %v2195_v30, %s2112_s10  ;;  %v1885_v30 = vpack.c.bf16 %v1975_v42, %v1974_v43 }
 0x5ae   :  { %v500_v33 = vpop.xlane.xlu1 %499 }
 0x5af   :  { %2003 = vrcp.f32 %v500_v33 }
 0x5b2   :  { %v497_v34 = vpop.xlane.xlu1 %496 }
 0x5b3   :  { %2005 = vrcp.f32 %v497_v34 }
 0x5b6   :  { %v1968_v35 = vpop.permute.xlu1 %1967 }
 0x5b7   :  { %v1970_v36 = vunpack.i.h.bf16 %v1968_v35  ;;  %v1969_v37 = vunpack.i.l.bf16 %v1968_v35 }
 0x5b9   :  { %v1881_v38 = vpack.c.bf16 %v1970_v36, %v1969_v37  ;;  %v2004_v41 = vpop.eup %2003 }
 0x5ba   :  { %v504_v45 = vmul.f32 %v2004_v41, %v494_v27  ;;  %v755_v46 = vpop.permute.xlu1 %754 }
 0x5bb   :  { %1882 = vmatprep.subr.bf16.mxu1 %v1881_v38 }
 0x5bc   :  { %1884 = vmatpush3.bf16.msra.mxu1 %v1881_v38 }
 0x5bd   :  { %v2006_v24 = vpop.eup %2005  ;;  %1771 = vmatprep.subr.mxu1 %v183_v40 }
 0x5be   :  { %v503_v44 = vmul.f32 %v2006_v24, %v493_v31  ;;  %v757_v47 = vpop.permute.xlu1 %756 }
 0x5c0   :  { %1768 = vmatprep.mubr.msk.f32.mxu1 %vm278_vm3, %v503_v44 }
 0x5c1   :  { %1769 = vmatmul.mubr.msk.f32.vlgmr.msra.gmra.mrb[6].mxu1 %vm278_vm3, %v504_v45 }
 0x5c2   :  { %1772 = vmatpush3.msra.mxu1 %v183_v40  ;;  %v1978_v48 = vpop.permute.xlu1 %1977 }
 0x5c3   :  { %1887 = vmatprep.subr.msk.bf16.mxu1 %vm2187_vm2, %v1885_v30  ;;  %v1980_v49 = vunpack.i.h.bf16 %v1978_v48  ;;  %v1979_v50 = vunpack.i.l.bf16 %v1978_v48 }
 0x5c5   :  { %v1895_v53 = vpack.c.bf16 %v1980_v49, %v1979_v50 }
 0x5c6   :  { %v1042_v57 = vpop.permute.xlu1 %1041 }
 0x694   :  { %v1770_v51 = vpop.f32.mrb[6].mxu1 }
 0x695   :  { %v583_v52 = vpop.f32.mrb[7].mxu1 }
 0x696   :  { %1773 = vmatprep.mubr.msk.f32.mxu1 %vm192_vm1, %v583_v52 }
 0x697   :  { %1774 = vmatmul.mubr.msk.f32.vlgmr.msra.gmra.mrb[8].mxu1 %vm192_vm1, %v1770_v51 }
 0x698   :  { %1890 = vmatpush3.bf16.xpose.msk.msra.mxu1 %vm2187_vm2, %v1885_v30  ;;  %1785 = vmatprep.mubr.msk.f32.mxu1 %vm192_vm1, %v755_v46 }
 0x699   :  { %1897 = vmatprep.subr.msk.bf16.mxu1 %vm2187_vm2, %v1895_v53 }
 0x69f   :  { %1786 = vmatmul.mubr.msk.f32.vlgmr.msra.gmra.mrb[10].mxu1 %vm192_vm1, %v757_v47 }
 0x6a0   :  { %1900 = vmatpush3.bf16.xpose.msk.msra.mxu1 %vm2187_vm2, %v1895_v53  ;;  %1804 = vmatprep.mubr.msk.f32.mxu1 %vm192_vm1, %v1040_v55  ;;  %v185_v53 = vld [vmem:[#allocation5 + $0x58] sm:$0xff] }
 0x6a7   :  { %1805 = vmatmul.mubr.msk.f32.vlgmr.msra.gmra.mrb[12].mxu1 %vm192_vm1, %v1042_v57 }
 0x76a   :  { %v2264_v58 = vpop.f32.mrb[8].mxu1 }
 0x76b   :  { %v2266_v59 = vpop.f32.mrb[9].mxu1 }
 0x772   :  { %v1787_v60 = vpop.f32.mrb[10].mxu1 }
 0x773   :  { %v836_v61 = vpop.f32.mrb[11].mxu1  ;;  %v848_v62 = vsel %vm278_vm3, %v1787_v60, -inf }
 0x774   :  { %849 = vmax.xlane.f32.xlu1 %v848_v62  ;;  %v845_v63 = vsel %vm278_vm3, %v836_v61, -inf }
 0x775   :  { %846 = vmax.xlane.f32.xlu0 %v845_v63 }
 0x77a   :  { %v1806_v0 = vpop.f32.mrb[12].mxu1 }
 0x77b   :  { %v1121_v28 = vpop.f32.mrb[13].mxu1  ;;  %v1133_v21 = vsel %vm278_vm3, %v1806_v0, -inf }
 0x77c   :  { %v1130_v20 = vsel %vm278_vm3, %v1121_v28, -inf }
 0x785   :  { %1982 = vrot.lane.b32.xlu1 %v2178_v23, %s2116_s14 }
 0x789   :  { %1987 = vrot.lane.b32.xlu1 %v2178_v23, %s2117_s15 }
 0x801   :  { %v850_v1 = vpop.xlane.xlu1 %849 }
 0x802   :  { %v852_v2 = vsub.f32 %v1787_v60, %v850_v1  ;;  %v847_v3 = vpop.xlane.xlu0 %846  ;;  %v1326_v60 = vsub.s32 1, %v2172_v15 }
 0x803   :  { %v851_v4 = vsub.f32 %v836_v61, %v847_v3 }
 0x804   :  { %v855_v5 = vmul.f32 1.442695, %v852_v2  ;;  %v1327_v61 = vrot.slane %v2175_v17, %v1326_v60 }
 0x805   :  { %v853_v6 = vmul.f32 1.442695, %v851_v4  ;;  %v1983_v7 = vpop.permute.xlu1 %1982 }
 0x806   :  { %2007 = vpow2.f32 %v855_v5  ;;  %v1985_v9 = vunpack.i.h.bf16 %v1983_v7  ;;  %v1984_v10 = vunpack.i.l.bf16 %v1983_v7 }
 0x807   :  { %2009 = vpow2.f32 %v853_v6 }
 0x808   :  { %v1891_v11 = vpack.c.bf16 %v1985_v9, %v1984_v10 }
 0x809   :  { %v1988_v32 = vpop.permute.xlu1 %1987 }
 0x80a   :  { %1892 = vmatprep.subr.bf16.mxu0 %v1891_v11  ;;  %v1990_v37 = vunpack.i.h.bf16 %v1988_v32  ;;  %v1989_v38 = vunpack.i.l.bf16 %v1988_v32  ;;  %v1380_v32 = vld [vmem:[#allocation5 + $0xa0] sm:$0xff] }
 0x80b   :  { %1894 = vmatpush3.bf16.msra.mxu0 %v1891_v11 }
 0x80c   :  { %1795 = vmatprep.subr.mxu0 %v184_v22  ;;  %v1901_v24 = vpack.c.bf16 %v1990_v37, %v1989_v38 }
 0x810   :  { %v2008_v12 = vpop.eup %2007 }
 0x811   :  { %v2010_v14 = vpop.eup %2009  ;;  %v858_v18 = vsel %vm2209_vm4, %v2008_v12, 0.0 }
 0x812   :  { %v857_v16 = vsel %vm2213_vm5, %v2010_v14, 0.0  ;;  %v862_v19 = vsel %vm278_vm3, %v858_v18, 0.0 }
 0x813   :  { %v859_v23 = vsel %vm278_vm3, %v857_v16, 0.0 }
 0x814   :  { %860 = vadd.xlane.f32.xlu0 %v859_v23  ;;  %v1373_v23 = vld [vmem:[#allocation5 + $0x68] sm:$0xff] }
 0x818   :  { %863 = vadd.xlane.f32.xlu0 %v862_v19  ;;  %v1374_v19 = vld [vmem:[#allocation5 + $0x70] sm:$0xff] }
 0x81c   :  { %1131 = vmax.xlane.f32.xlu0 %v1130_v20  ;;  %v1375_v20 = vld [vmem:[#allocation5 + $0x78] sm:$0xff] }
 0x820   :  { %1134 = vmax.xlane.f32.xlu0 %v1133_v21  ;;  %v1909_v21 = vpack.c.bf16 %v1375_v20, %v1374_v19 }
 0x8a1   :  { %v861_v25 = vpop.xlane.xlu0 %860 }
 0x8a2   :  { %2011 = vrcp.f32 %v861_v25  ;;  %v1377_v25 = vld [vmem:[#allocation5 + $0x88] sm:$0xff] }
 0x8a5   :  { %v864_v26 = vpop.xlane.xlu0 %863 }
 0x8a6   :  { %2013 = vrcp.f32 %v864_v26  ;;  %v1378_v26 = vld [vmem:[#allocation5 + $0x90] sm:$0xff] }
 0x8a9   :  { %v1132_v27 = vpop.xlane.xlu0 %1131 }
 0x8aa   :  { %v1136_v29 = vsub.f32 %v1121_v28, %v1132_v27 }
 0x8ac   :  { %v2012_v31 = vpop.eup %2011  ;;  %v1138_v33 = vmul.f32 1.442695, %v1136_v29  ;;  %v1379_v29 = vld [vmem:[#allocation5 + $0x98] sm:$0xff] }
 0x8ad   :  { %v1135_v34 = vpop.xlane.xlu0 %1134  ;;  %v867_v35 = vmul.f32 %v2012_v31, %v857_v16  ;;  %v1917_v31 = vpack.c.bf16 %v1379_v29, %v1378_v26  ;;  %v1586_v26 = vsub.s32 6, %v2172_v15 }
 0x8ae   :  { %2015 = vpow2.f32 %v1138_v33  ;;  %v1137_v36 = vsub.f32 %v1806_v0, %v1135_v34  ;;  %v1381_v33 = vld [vmem:[#allocation5 + $0xa8] sm:$0xff] }
 0x8af   :  { %1792 = vmatprep.mubr.msk.f32.mxu0 %vm278_vm3, %v867_v35  ;;  %v1921_v34 = vpack.c.bf16 %v1381_v33, %v1380_v32  ;;  %v1587_v29 = vrot.slane %v2175_v17, %v1586_v26 }
 0x8b0   :  { %v2014_v39 = vpop.eup %2013  ;;  %v1140_v40 = vmul.f32 1.442695, %v1137_v36 }
 0x8b1   :  { %v868_v41 = vmul.f32 %v2014_v39, %v858_v18 }
 0x8b2   :  { %2017 = vpow2.f32 %v1140_v40 }
 0x8b3   :  { %1793 = vmatmul.mubr.msk.f32.vlgmr.msra.gmra.mrb[4].mxu0 %vm278_vm3, %v868_v41  ;;  %v1362_v41 = vsub.s32 4, %v2172_v15 }
 0x8b4   :  { %1796 = vmatpush3.msra.mxu0 %v184_v22  ;;  %v1376_v22 = vld [vmem:[#allocation5 + $0x80] sm:$0xff] }
 0x8b5   :  { %1902 = vmatprep.subr.bf16.mxu0 %v1901_v24  ;;  %v1913_v27 = vpack.c.bf16 %v1377_v25, %v1376_v22 }
 0x8b8   :  { %v2016_v42 = vpop.eup %2015 }
 0x8b9   :  { %v1142_v43 = vsel %vm2213_vm5, %v2016_v42, 0.0  ;;  %v1363_v42 = vrot.slane %v2175_v17, %v1362_v41 }
 0x8ba   :  { %v1144_v44 = vsel %vm278_vm3, %v1142_v43, 0.0 }
 0x8bb   :  { %1145 = vadd.xlane.f32.xlu0 %v1144_v44 }
 0x8bc   :  { %v2018_v45 = vpop.eup %2017 }
 0x8bd   :  { %v1143_v30 = vsel %vm2209_vm4, %v2018_v45, 0.0 }
 0x8be   :  { %v1147_v46 = vsel %vm278_vm3, %v1143_v30, 0.0 }
 0x8bf   :  { %1148 = vadd.xlane.f32.xlu0 %v1147_v46 }
 0x948   :  { %v1146_v47 = vpop.xlane.xlu0 %1145 }
 0x949   :  { %2019 = vrcp.f32 %v1146_v47 }
 0x94c   :  { %v1149_v48 = vpop.xlane.xlu0 %1148 }
 0x94d   :  { %2021 = vrcp.f32 %v1149_v48 }
 0x953   :  { %v2020_v49 = vpop.eup %2019 }
 0x954   :  { %v1152_v56 = vmul.f32 %v2020_v49, %v1142_v43 }
 0x957   :  { %v2022_v52 = vpop.eup %2021 }
 0x958   :  { %v1153_v54 = vmul.f32 %v2022_v52, %v1143_v30  ;;  %v1383_v52 = vld [vmem:[#allocation5 + $0xb8] sm:$0xff] }
 0x986   :  { %v1794_v50 = vpop.f32.mrb[4].mxu0 }
 0x987   :  { %v947_v51 = vpop.f32.mrb[5].mxu0 }
 0x988   :  { %1797 = vmatprep.mubr.msk.f32.mxu0 %vm192_vm1, %v947_v51  ;;  %v1382_v51 = vld [vmem:[#allocation5 + $0xb0] sm:$0xff] }
 0x989   :  { %1798 = vmatmul.mubr.msk.f32.vlgmr.msra.gmra.mrb[2].mxu0 %vm192_vm1, %v1794_v50 }
 0x98a   :  { %1904 = vmatpush3.bf16.msra.mxu0 %v1901_v24  ;;  %1811 = vmatprep.mubr.msk.f32.mxu0 %vm278_vm3, %v1152_v56  ;;  %v1368_v24 = vsub.s32 5, %v2172_v15  ;;  %v1925_v56 = vpack.c.bf16 %v1383_v52, %v1382_v51 }
 0x98b   :  { %1814 = vmatprep.subr.mxu0 %v185_v53 }
 0x98c   :  { %v1369_v45 = vrot.slane %v2175_v17, %v1368_v24 }
 0x98d   :  { %1812 = vmatmul.mubr.msk.f32.vlgmr.msra.gmra.mrb[6].mxu0 %vm278_vm3, %v1153_v54 }
 0x98e   :  { %1815 = vmatpush3.msra.mxu0 %v185_v53  ;;  %v1386_v53 = vsub.s32 2, %v2172_v15 }
 0x98f   :  { %1914 = vmatprep.subr.bf16.mxu0 %v1913_v27 }
 0x990   :  { %v1387_v54 = vrot.slane %v2175_v17, %v1386_v53 }
 0xa60   :  { %v1813_v55 = vpop.f32.mrb[6].mxu0 }
 0xa61   :  { %v1232_v57 = vpop.f32.mrb[7].mxu0 }
 0xa62   :  { %1816 = vmatprep.mubr.msk.f32.mxu0 %vm192_vm1, %v1232_v57 }
 0xa63   :  { %1817 = vmatmul.mubr.msk.f32.vlgmr.msra.gmra.mrb[2].mxu0 %vm192_vm1, %v1813_v55 }
 0xa64   :  { %1916 = vmatpush3.bf16.msra.mxu0 %v1913_v27  ;;  %v1592_v27 = vsub.s32 7, %v2172_v15 }
 0xa65   :  { %1918 = vmatprep.subr.bf16.mxu0 %v1917_v31 }
 0xa66   :  { %v1593_v33 = vrot.slane %v2175_v17, %v1592_v27 }
 0xa68   :  { %1920 = vmatpush3.bf16.msra.mxu0 %v1917_v31 }
 0xa69   :  { %1922 = vmatprep.subr.bf16.mxu0 %v1921_v34 }
 0xa6c   :  { %1924 = vmatpush3.bf16.msra.mxu0 %v1921_v34 }
 0xa6d   :  { %1926 = vmatprep.subr.bf16.mxu0 %v1925_v56 }
 0xa70   :  { %1928 = vmatpush3.bf16.msra.mxu0 %v1925_v56 }
 0xb36   :  { %v1818_v62 = vpop.f32.mrb[2].mxu0 }
 0xb37   :  { %v1929_v63 = vadd.f32 %v1818_v62, %v2264_v58  ;;  %v1313_v0 = vpop.f32.mrb[3].mxu0 }
 0xb38   :  { %v1930_v28 = vadd.f32 %v1313_v0, %v2266_v59  ;;  %v1473_v0 = vsub.s32 3, %v2172_v15 }
 0xb39   :  { %v1329_v1 = vadd.f32 %v1929_v63, %v1327_v61 }
 0xb3a   :  { %v1328_v2 = vadd.f32 %v1930_v28, %v1327_v61  ;;  %v1474_v28 = vrot.slane %v2175_v17, %v1473_v0 }
 0xb3b   :  { %v1331_v3 = vadd.f32 %v1329_v1, %v2168_v13 }
 0xb3c   :  { %v1330_v4 = vadd.f32 %v1328_v2, %v2164_v8  ;;  %v1372_v8 = vld [vmem:[#allocation5 + $0x60] sm:$0xff] }
 0xb3d   :  { %v1336_v5 = vsel %vm1332_vm6, %v1331_v3, 0.0  ;;  %v1905_v18 = vpack.c.bf16 %v1373_v23, %v1372_v8 }
 0xb3e   :  { %1337 = vadd.xlane.f32.xlu1 %v1336_v5  ;;  %v1333_v6 = vsel %vm1332_vm6, %v1330_v4, 0.0 }
 0xb3f   :  { %1334 = vadd.xlane.f32.xlu0 %v1333_v6  ;;  %1906 = vmatprep.subr.bf16.mxu1 %v1905_v18 }
 0xb40   :  { %1908 = vmatpush3.bf16.msra.mxu1 %v1905_v18 }
 0xb41   :  { %1910 = vmatprep.subr.bf16.mxu1 %v1909_v21 }
 0xb44   :  { %1912 = vmatpush3.bf16.msra.mxu1 %v1909_v21 }
 0xbcb   :  { %v1338_v7 = vpop.xlane.xlu1 %1337 }
 0xbcc   :  { %v1341_v9 = vmul.f32 0.03125, %v1338_v7  ;;  %v1335_v10 = vpop.xlane.xlu0 %1334 }
 0xbcd   :  { %v1340_v58 = vmul.f32 0.03125, %v1335_v10 }
 0xbce   :  { %v1343_v11 = vsub.f32 %v1331_v3, %v1341_v9 }
 0xbcf   :  { %v1342_v12 = vsub.f32 %v1330_v4, %v1340_v58 }
 0xbd0   :  { %v1345_v16 = vmul.f32 %v1343_v11, %v1343_v11 }
 0xbd1   :  { %v1344_v59 = vmul.f32 %v1342_v12, %v1342_v12 }
 0xbd2   :  { %v1349_v13 = vsel %vm1332_vm6, %v1345_v16, 0.0 }
 0xbd3   :  { %v1346_v14 = vsel %vm1332_vm6, %v1344_v59, 0.0 }
 0xbd4   :  { %1347 = vadd.xlane.f32.xlu0 %v1346_v14 }
 0xbd8   :  { %1350 = vadd.xlane.f32.xlu0 %v1349_v13 }
 0xc61   :  { %v1348_v35 = vpop.xlane.xlu0 %1347 }
 0xc62   :  { %v1352_v36 = vmul.f32 0.03125, %v1348_v35 }
 0xc64   :  { %v1354_v37 = vadd.f32 1e-05, %v1352_v36 }
 0xc65   :  { %v1351_v38 = vpop.xlane.xlu0 %1350 }
 0xc66   :  { %2023 = vrsqrt.f32 %v1354_v37  ;;  %v1353_v39 = vmul.f32 0.03125, %v1351_v38 }
 0xc68   :  { %v1355_v40 = vadd.f32 1e-05, %v1353_v39 }
 0xc6a   :  { %2025 = vrsqrt.f32 %v1355_v40 }
 0xc70   :  { %v2024_v43 = vpop.eup %2023 }
 0xc71   :  { %v1358_v44 = vmul.f32 %v2024_v43, %v1342_v12 }
 0xc73   :  { %v1364_v30 = vmul.f32 %v1363_v42, %v1358_v44 }
 0xc74   :  { %v2026_v46 = vpop.eup %2025 }
 0xc75   :  { %v1359_v47 = vmul.f32 %v2026_v46, %v1343_v11  ;;  %v1370_v48 = vadd.f32 %v1369_v45, %v1364_v30 }
 0xc77   :  { %v1365_v49 = vmul.f32 %v1363_v42, %v1359_v47  ;;  %1827 = vmatprep.mubr.msk.f32.mxu1 %vm1332_vm6, %v1370_v48 }
 0xc79   :  { %v1371_v50 = vadd.f32 %v1369_v45, %v1365_v49 }
 0xc7b   :  { %1828 = vmatmul.mubr.msk.f32.vlgmr.msra.gmra.mrb[14].mxu1 %vm1332_vm6, %v1371_v50 }
 0xd4e   :  { %v1829_v55 = vpop.f32.mrb[14].mxu1 }
 0xd4f   :  { %v1466_v57 = vadd.f32 %v1829_v55, %v1387_v54  ;;  %v1460_v60 = vpop.f32.mrb[15].mxu1 }
 0xd50   :  { %v1461_v61 = vadd.f32 %v1460_v60, %v1387_v54 }
 0xd51   :  { %v1470_v63 = vmax.f32 %v1466_v57, 0.0 }
 0xd52   :  { %v1469_v62 = vmax.f32 %v1461_v61, 0.0 }
 0xd54   :  { %1846 = vmatprep.mubr.msk.f32.mxu0 %vm55_vm0, %v1469_v62 }
 0xd55   :  { %1847 = vmatmul.mubr.msk.f32.vlgmr.msra.gmra.mrb[8].mxu0 %vm55_vm0, %v1470_v63 }
 0xe28   :  { %v1848_v1 = vpop.f32.mrb[8].mxu0 }
 0xe29   :  { %v1547_v2 = vpop.f32.mrb[9].mxu0  ;;  %v1553_v3 = vadd.f32 %v1848_v1, %v1474_v28 }
 0xe2a   :  { %v1548_v4 = vadd.f32 %v1547_v2, %v1474_v28 }
 0xe2b   :  { %v1557_v7 = vadd.f32 %v1553_v3, %v1371_v50 }
 0xe2c   :  { %v1556_v5 = vadd.f32 %v1548_v4, %v1370_v48 }
 0xe2d   :  { %v1561_v9 = vsel %vm1332_vm6, %v1557_v7, 0.0 }
 0xe2e   :  { %v1558_v6 = vsel %vm1332_vm6, %v1556_v5, 0.0 }
 0xe2f   :  { %1559 = vadd.xlane.f32.xlu0 %v1558_v6 }
 0xe33   :  { %1562 = vadd.xlane.f32.xlu0 %v1561_v9 }
 0xebc   :  { %v1560_v10 = vpop.xlane.xlu0 %1559 }
 0xebd   :  { %v1564_v58 = vmul.f32 0.03125, %v1560_v10 }
 0xebf   :  { %v1566_v11 = vsub.f32 %v1556_v5, %v1564_v58 }
 0xec0   :  { %v1563_v12 = vpop.xlane.xlu0 %1562 }
 0xec1   :  { %v1565_v59 = vmul.f32 0.03125, %v1563_v12  ;;  %v1568_v14 = vmul.f32 %v1566_v11, %v1566_v11 }
 0xec3   :  { %v1567_v16 = vsub.f32 %v1557_v7, %v1565_v59  ;;  %v1570_v13 = vsel %vm1332_vm6, %v1568_v14, 0.0 }
 0xec4   :  { %1571 = vadd.xlane.f32.xlu0 %v1570_v13 }
 0xec5   :  { %v1569_v8 = vmul.f32 %v1567_v16, %v1567_v16 }
 0xec7   :  { %v1573_v23 = vsel %vm1332_vm6, %v1569_v8, 0.0 }
 0xec8   :  { %1574 = vadd.xlane.f32.xlu0 %v1573_v23 }
 0xf51   :  { %v1572_v18 = vpop.xlane.xlu0 %1571 }
 0xf52   :  { %v1576_v19 = vmul.f32 0.03125, %v1572_v18 }
 0xf54   :  { %v1578_v20 = vadd.f32 1e-05, %v1576_v19 }
 0xf55   :  { %v1575_v21 = vpop.xlane.xlu0 %1574 }
 0xf56   :  { %2027 = vrsqrt.f32 %v1578_v20  ;;  %v1577_v22 = vmul.f32 0.03125, %v1575_v21 }
 0xf58   :  { %v1579_v25 = vadd.f32 1e-05, %v1577_v22 }
 0xf5a   :  { %2029 = vrsqrt.f32 %v1579_v25 }
 0xf60   :  { %v2028_v31 = vpop.eup %2027 }
 0xf61   :  { %v1582_v32 = vmul.f32 %v2028_v31, %v1566_v11 }
 0xf63   :  { %v1588_v34 = vmul.f32 %v1587_v29, %v1582_v32 }
 0xf64   :  { %v2030_v35 = vpop.eup %2029 }
 0xf65   :  { %v1583_v36 = vmul.f32 %v2030_v35, %v1567_v16  ;;  %v1594_v37 = vadd.f32 %v1593_v33, %v1588_v34 }
 0xf67   :  { %v1589_v38 = vmul.f32 %v1587_v29, %v1583_v36  ;;  %1596 = vst.msk [vmem:[#allocation7] sm:$0xff] %vm1332_vm6, %v1594_v37 }
 0xf69   :  { %v1595_v39 = vadd.f32 %v1593_v33, %v1589_v38 }
 0xf6b   :  { %1597 = vst.msk [vmem:[#allocation7 + $0x8] sm:$0xff] %vm1332_vm6, %v1595_v39 }
 0xf6c   :  { %2086 = shalt.err (!%p2083_p6)
}
 0xf6d   :  { %s2087_s23 = scalar_lea.hbm %s2343_s2, 256 }
 0xf6e   :  { %p2088_p7 = scmp.ne.s32.totalorder %s2343_s2, %s2087_s23  ;;  %p2091_p8 = scmp.lt.u32.totalorder %s2087_s23, %s2343_s2 }
 0xf70   :  { %p2093_p9 = pnand %p2091_p8, %p2088_p7 }
 0xf72   :  { %2096 = shalt.err (!%p2093_p9)
}
 0xf73   :  { %1609 = dma.vmem_to_hbm [thread:$0]  %s1604_s17, 256, %s2343_s2, [#allocation4], %s2104_s19, %s2104_s19, %s2105_s20  }
 0xf74   :  { %2101 = dma.done.wait [#allocation4], 256  }
 0xf75   :  { %2102 = vsyncadd [#allocation4], 4294967040 }
 0xf76   :  { %1613 = vsyncpa [#allocation3], 1 }
 0xf77   :  { %1614 = vsyncpa [#allocation6], 1 }
 0xf78   :  { %1615 = vsyncpa [#allocation4], 1 }

</bundles_post_ra>
